<compile_context>
chip_gen: v7x
topology: tpu7x:2x2x1
jax: 0.10.0
libtpu: 0.0.40
codegen_flags: <defaults>
</compile_context>

<pallas_src>
import functools

import jax
import jax.numpy as jnp
from jax import lax
from jax.experimental import pallas as pl
from jax.experimental.pallas import tpu as pltpu


_VMEM_LIMIT_BYTES = 48 * 1024 * 1024   # <= ~48 MiB: safe on v7x (64 MiB phys), roomy on v5e/v6e
_TILE_VMEM_BUDGET = 36 * 1024 * 1024   # tile footprint target, leaves headroom under the limit


def _focal_loss_kernel(x_ref, t_ref, out_ref, *, alpha, gamma, n, tile_n, num_tiles):
    pid = pl.program_id(0)

    x = x_ref[...].astype(jnp.float32)              # (tile_n, C)
    t = t_ref[...]                                  # (tile_n, 1) int32

    # Numerically stable softmax pieces; the full prob matrix is never formed —
    # only the target-class numerator and the row denominator are needed.
    m = jnp.max(x, axis=1, keepdims=True)           # (tile_n, 1)
    e = jnp.exp(x - m)                              # (tile_n, C)
    denom = jnp.sum(e, axis=1, keepdims=True)       # (tile_n, 1)

    # Target-class numerator via a select (no int->f32 convert, no full-width mul).
    col = lax.broadcasted_iota(jnp.int32, x.shape, 1)
    e_t = jnp.sum(jnp.where(col == t, e, 0.0), axis=1, keepdims=True)   # (tile_n, 1)

    pt = e_t * pl.reciprocal(denom)                 # exact reciprocal for parity w/ reference
    d = 1.0 - pt
    if gamma == 2.0:
        mod = d * d                                 # no exp(log(.)) round trip
    elif gamma == float(int(gamma)) and gamma >= 0.0:
        mod = lax.integer_pow(d, int(gamma))
    else:
        mod = jnp.power(d, jnp.float32(gamma))
    loss = (-alpha * mod) * jnp.log(pt + 1e-6)      # (tile_n, 1)

    def write(partial):
        # Lane-dense (1, 8, 128) output block; wrapper reads [i, 0, 0].
        out_ref[...] = jnp.full(out_ref.shape, partial, dtype=jnp.float32)

    rem = n - (num_tiles - 1) * tile_n              # static Python int
    if rem == tile_n:
        # N divides evenly: no masking anywhere.
        write(jnp.sum(loss))
    else:
        # Mask only the (single) partial last tile; all other tiles stay unmasked.
        @pl.when(pid != num_tiles - 1)
        def _():
            write(jnp.sum(loss))

        @pl.when(pid == num_tiles - 1)
        def _():
            row = lax.broadcasted_iota(jnp.int32, loss.shape, 0)
            write(jnp.sum(jnp.where(row < rem, loss, 0.0)))


def _pick_tile_n(n, c, itemsize):
    """Rows per block, sized by padded-VMEM bytes (no fixed row cap)."""
    c_pad = max(128, -(-c // 128) * 128)            # lane padding of the logits block
    # Padded VMEM bytes per tile row:
    #   2 buffers x logits block                    : 2 * c_pad * itemsize
    #   2 buffers x targets block (pads to 128 lanes of int32)
    #                                               : 2 * 128 * 4
    #   ~3 block-sized f32 temporaries (f32 cast, e, select result)
    #                                               : 3 * c_pad * 4
    per_row = 2 * c_pad * itemsize + 2 * 128 * 4 + 3 * c_pad * 4
    t = _TILE_VMEM_BUDGET // per_row
    t = max(16, (t // 16) * 16)                     # multiple of 16: f32 and bf16 sublane packing
    return n if t >= n else t


def focal_loss(inputs, targets, *, alpha=1.0, gamma=2.0, reduction="mean", tile_n=None):
    """inputs: (N, C) float32/bfloat16 logits; targets: (N,) int class ids -> scalar loss."""
    n, c = inputs.shape
    if tile_n is None:
        tile_n = _pick_tile_n(n, c, inputs.dtype.itemsize)
    num_tiles = -(-n // tile_n)
    targets_2d = targets.astype(jnp.int32).reshape(n, 1)

    kernel = functools.partial(
        _focal_loss_kernel,
        alpha=float(alpha), gamma=float(gamma),
        n=n, tile_n=tile_n, num_tiles=num_tiles,
    )

    partials = pl.pallas_call(
        kernel,
        out_shape=jax.ShapeDtypeStruct((num_tiles, 8, 128), jnp.float32),
        grid_spec=pltpu.PrefetchScalarGridSpec(
            num_scalar_prefetch=0,
            grid=(num_tiles,),
            in_specs=[
                pl.BlockSpec((tile_n, c), lambda i: (i, 0)),   # logits tile
                pl.BlockSpec((tile_n, 1), lambda i: (i, 0)),   # targets tile
            ],
            # One lane-dense block per tile; no revisited output.
            out_specs=pl.BlockSpec((1, 8, 128), lambda i: (i, 0, 0)),
        ),
        compiler_params=pltpu.CompilerParams(
            dimension_semantics=("parallel",),       # tiles are independent -> 2 TCs on v7x
            vmem_limit_bytes=_VMEM_LIMIT_BYTES,
        ),
    )(inputs, targets_2d)

    total = jnp.sum(partials[:, 0, 0])               # tree-reduced: no serial f32 drift
    if reduction == "sum":
        return total
    if reduction == "mean":
        return total / jnp.float32(n)
    # TODO(synk): reduction='none' (per-sample loss vector) is not implemented.
    raise NotImplementedError("reduction must be 'mean' or 'sum'")


def _reference_focal_loss(inputs, targets, *, alpha=1.0, gamma=2.0):
    # Pure-JAX reference mirroring the PyTorch module (reduction='mean').
    probs = jax.nn.softmax(inputs.astype(jnp.float32), axis=1)
    one_hot = jax.nn.one_hot(targets, inputs.shape[1], dtype=jnp.float32)
    pt = jnp.sum(probs * one_hot, axis=1)
    focal = -alpha * (1.0 - pt) ** gamma
    loss = focal * jnp.log(pt + 1e-6)
    return jnp.mean(loss)


if __name__ == "__main__":
    key = jax.random.PRNGKey(0)
    k1, k2, k3, k4, k5, k6 = jax.random.split(key, 6)

    # Case 1: small, single-tile path.
    N1, C1 = 8, 16
    logits1 = jax.random.normal(k1, (N1, C1), dtype=jnp.float32)
    targets1 = jax.random.randint(k2, (N1,), 0, C1, dtype=jnp.int32)
    out1 = jax.block_until_ready(focal_loss(logits1, targets1, alpha=1.0, gamma=2.0))
    ref1 = _reference_focal_loss(logits1, targets1, alpha=1.0, gamma=2.0)
    assert jnp.allclose(out1, ref1, atol=1e-5, rtol=1e-5), (out1, ref1)

    # Case 2: multi-tile with a partial last tile (per-tile partial sums + last-tile mask).
    N2, C2 = 20, 16
    logits2 = jax.random.normal(k3, (N2, C2), dtype=jnp.float32)
    targets2 = jax.random.randint(k4, (N2,), 0, C2, dtype=jnp.int32)
    out2 = jax.block_until_ready(
        focal_loss(logits2, targets2, alpha=1.0, gamma=2.0, tile_n=8)
    )
    ref2 = _reference_focal_loss(logits2, targets2, alpha=1.0, gamma=2.0)
    assert jnp.allclose(out2, ref2, atol=1e-5, rtol=1e-5), (out2, ref2)

    # Case 3: bf16 logits (halves HBM traffic; kernel upcasts in-register), 16-row tiles.
    N3, C3 = 24, 16
    logits3 = jax.random.normal(k5, (N3, C3), dtype=jnp.float32).astype(jnp.bfloat16)
    targets3 = jax.random.randint(k6, (N3,), 0, C3, dtype=jnp.int32)
    out3 = jax.block_until_ready(
        focal_loss(logits3, targets3, alpha=1.0, gamma=2.0, tile_n=16)
    )
    ref3 = _reference_focal_loss(logits3, targets3, alpha=1.0, gamma=2.0)
    assert jnp.allclose(out3, ref3, atol=1e-5, rtol=1e-5), (out3, ref3)

    print("KERNEL_OK")
</pallas_src>

<mosaic_0001>
module attributes {stable_mosaic.version = 11 : i64} {
  func.func @_focal_loss_kernel(%arg0: i32, %arg1: memref<8x16xf32, #tpu.memory_space<vmem>>, %arg2: memref<8x1xi32, #tpu.memory_space<vmem>>, %arg3: memref<1x8x128xf32, #tpu.memory_space<vmem>>) attributes {dimension_semantics = [#tpu.dimension_semantics<parallel>], iteration_bounds = array<i64: 1>, scalar_prefetch = 0 : i64, scratch_operands = 0 : i64, tpu.core_type = #tpu.core_type<tc>, window_params = [{transform_indices = @transform_0, window_bounds = array<i64: 8, 16>}, {transform_indices = @transform_1, window_bounds = array<i64: 8, 1>}, {transform_indices = @transform_2, window_bounds = array<i64: 1, 8, 128>}]} {
    %c0 = arith.constant 0 : index
    %c0_0 = arith.constant 0 : index
    %0 = vector.load %arg1[%c0, %c0_0] : memref<8x16xf32, #tpu.memory_space<vmem>>, vector<8x16xf32>
    %c0_1 = arith.constant 0 : index
    %c0_2 = arith.constant 0 : index
    %1 = vector.load %arg2[%c0_1, %c0_2] : memref<8x1xi32, #tpu.memory_space<vmem>>, vector<8x1xi32>
    %cst = arith.constant dense<0xFF800000> : vector<8xf32>
    %2 = vector.multi_reduction <maximumf>, %0, %cst [1] : vector<8x16xf32> to vector<8xf32>
    %3 = vector.shape_cast %2 : vector<8xf32> to vector<8x1xf32>
    %4 = vector.broadcast %3 : vector<8x1xf32> to vector<8x16xf32>
    %5 = arith.subf %0, %4 : vector<8x16xf32>
    %6 = math.exp %5 : vector<8x16xf32>
    %cst_3 = arith.constant dense<0.000000e+00> : vector<8xf32>
    %7 = vector.multi_reduction <add>, %6, %cst_3 [1] : vector<8x16xf32> to vector<8xf32>
    %8 = vector.shape_cast %7 : vector<8xf32> to vector<8x1xf32>
    %9 = tpu.iota {dimensions = array<i32: 1>} : vector<8x16xi32>
    %10 = vector.broadcast %1 : vector<8x1xi32> to vector<8x16xi32>
    %11 = arith.cmpi eq, %9, %10 : vector<8x16xi32>
    %cst_4 = arith.constant 0.000000e+00 : f32
    %12 = vector.broadcast %cst_4 : f32 to vector<8x16xf32>
    %13 = arith.select %11, %6, %12 : vector<8x16xi1>, vector<8x16xf32>
    %cst_5 = arith.constant dense<0.000000e+00> : vector<8xf32>
    %14 = vector.multi_reduction <add>, %13, %cst_5 [1] : vector<8x16xf32> to vector<8xf32>
    %15 = vector.shape_cast %14 : vector<8xf32> to vector<8x1xf32>
    %16 = tpu.reciprocal %8 : vector<8x1xf32> -> vector<8x1xf32>
    %17 = arith.mulf %15, %16 : vector<8x1xf32>
    %cst_6 = arith.constant 1.000000e+00 : f32
    %18 = vector.broadcast %cst_6 : f32 to vector<8x1xf32>
    %19 = arith.subf %18, %17 : vector<8x1xf32>
    %20 = arith.mulf %19, %19 : vector<8x1xf32>
    %cst_7 = arith.constant -1.000000e+00 : f32
    %21 = vector.broadcast %cst_7 : f32 to vector<8x1xf32>
    %22 = arith.mulf %21, %20 : vector<8x1xf32>
    %cst_8 = arith.constant 9.99999997E-7 : f32
    %23 = vector.broadcast %cst_8 : f32 to vector<8x1xf32>
    %24 = arith.addf %17, %23 : vector<8x1xf32>
    %25 = math.log %24 : vector<8x1xf32>
    %26 = arith.mulf %22, %25 : vector<8x1xf32>
    %27 = vector.shape_cast %26 : vector<8x1xf32> to vector<1x8x1xf32>
    %cst_9 = arith.constant dense<0.000000e+00> : vector<1xf32>
    %28 = vector.multi_reduction <add>, %27, %cst_9 [1, 2] : vector<1x8x1xf32> to vector<1xf32>
    %29 = vector.shape_cast %28 : vector<1xf32> to vector<1x1x1xf32>
    %30 = vector.extract %29[0, 0, 0] : f32 from vector<1x1x1xf32>
    %31 = vector.broadcast %30 : f32 to vector<1x8x128xf32>
    %c0_10 = arith.constant 0 : index
    %c0_11 = arith.constant 0 : index
    %c0_12 = arith.constant 0 : index
    %32 = vector.load %arg3[%c0_10, %c0_11, %c0_12] : memref<1x8x128xf32, #tpu.memory_space<vmem>>, vector<1x8x128xf32>
    tpu.vector_store %arg3[%c0_10, %c0_11, %c0_12], %31 {strides = array<i32>} : memref<1x8x128xf32, #tpu.memory_space<vmem>>, vector<1x8x128xf32>,
    return
  }
  func.func @transform_0(%arg0: i32) -> (i32, i32) {
    %c0_i32 = arith.constant 0 : i32
    %c0_i32_0 = arith.constant 0 : i32
    return %arg0, %c0_i32 : i32, i32
  }
  func.func @transform_1(%arg0: i32) -> (i32, i32) {
    %c0_i32 = arith.constant 0 : i32
    %c0_i32_0 = arith.constant 0 : i32
    return %arg0, %c0_i32 : i32, i32
  }
  func.func @transform_2(%arg0: i32) -> (i32, i32, i32) {
    %c0_i32 = arith.constant 0 : i32
    %c0_i32_0 = arith.constant 0 : i32
    %c0_i32_1 = arith.constant 0 : i32
    return %arg0, %c0_i32, %c0_i32_0 : i32, i32, i32
  }
}

</mosaic_0001>

<bundles_post_ra>
// kernel: tpu_custom_call.1
= control target key start
LH: loop header
LB: loop body
LE: loop exit
PB: predicated region body
PF: predicated region fallthrough
CT: control target
= control target key end

     0   :  { %vm14_vm0 = vcmask 130048   ;;  %s143_s0 = inlined_call_operand.vmem [shape: f32[8,16], index: 0, kind: input, shape index: {}]   ;;  %s144_s1 = inlined_call_operand.vmem [shape: s32[8,1], index: 1, kind: input, shape index: {}]   ;;  %s145_s2 = inlined_call_operand.hbm [shape: f32[1,8,128], index: 2, kind: output, shape index: {}]  }
   0x1   :  { %v12_v0 = vld [vmem:[%s143_s0] sm:$0xff] }
   0x2   :  { %7 = vsyncpa [#allocation3], 0  ;;  %v15_v1 = vsel %vm14_vm0, %v12_v0, -inf  ;;  %v105_v2 = vmov 0   ;;  %v13_v3 = vld [vmem:[%s144_s1] sm:$0xff]  ;;  %v24_v7 = vlaneseq  ;;  %vm43_vm2 = vcmask 7168  }
   0x3   :  { %74 = vset.pattern.permute.xlu0 %v105_v2  ;;  %s106_s0 = smov [#allocation2]  }
   0x4   :  { %16 = vmax.xlane.f32.xlu0 %v15_v1  ;;  %v25_v8 = vand.u32 127, %v24_v7  ;;  %s62_s1 = sshll.u32 %s106_s0, 4  ;;  %s63_s1 = int_to_ptr.vmem [resolvable:$true] %s62_s1 }
   0x5   :  { %s81_s14 = scalar_lea.vmem %s63_s1, 128  ;;  %p86_p1 = scmp.lt.s32.totalorder %s63_s1, %s63_s1 }
   0x6   :  { %p82_p0 = scmp.ne.s32.totalorder %s63_s1, %s81_s14  ;;  %p87_p2 = scmp.lt.s32.totalorder %s81_s14, %s81_s14 }
   0x8   :  { %p88_p3 = por %p87_p2, %p86_p1 }
   0xa   :  { %p89_p4 = pnand %p88_p3, %p82_p0 }
  0x1a   :  { %27 = vperm.xlu0 %74, %v13_v3  }
  0x91   :  { %v17_v4 = vpop.xlane.xlu0 %16 }
  0x92   :  { %v18_v5 = vsub.f32 %v12_v0, %v17_v4 }
  0x94   :  { %v19_v6 = vmul.f32 1.442695, %v18_v5 }
  0x96   :  { %75 = vpow2.f32 %v19_v6 }
  0x99   :  { %v28_v9 = vpop.permute.xlu0 %27 }
  0x9a   :  { %vm29_vm1 = vcmp.eq.s32.totalorder %v25_v8, %v28_v9 }
  0xa0   :  { %v76_v10 = vpop.eup %75 }
  0xa1   :  { %v21_v11 = vsel %vm14_vm0, %v76_v10, 0.0  ;;  %v30_v12 = vsel %vm29_vm1, %v76_v10, 0.0 }
  0xa2   :  { %22 = vadd.xlane.f32.xlu1 %v21_v11  ;;  %v31_v13 = vsel %vm14_vm0, %v30_v12, 0.0 }
  0xa6   :  { %32 = vadd.xlane.f32.xlu1 %v31_v13 }
 0x12f   :  { %v23_v14 = vpop.xlane.xlu1 %22 }
 0x130   :  { %77 = vrcp.f32 %v23_v14 }
 0x133   :  { %v33_v16 = vpop.xlane.xlu1 %32 }
 0x13a   :  { %v78_v15 = vpop.eup %77 }
 0x13b   :  { %v35_v17 = vmul.f32 %v78_v15, %v33_v16 }
 0x13d   :  { %v39_v18 = vadd.f32 1e-06, %v35_v17  ;;  %v36_v19 = vsub.f32 1.0, %v35_v17 }
 0x13f   :  { %79 = vlog2.f32 %v39_v18  ;;  %v37_v20 = vmul.f32 %v36_v19, %v36_v19 }
 0x141   :  { %v38_v22 = vmul.f32 -1.0, %v37_v20 }
 0x149   :  { %v80_v21 = vpop.eup %79 }
 0x14a   :  { %v41_v23 = vmul.f32 0.6931472, %v80_v21 }
 0x14c   :  { %v42_v24 = vmul.f32 %v41_v23, %v38_v22 }
 0x14e   :  { %v44_v25 = vsel %vm43_vm2, %v42_v24, 0.0 }
 0x14f   :  { %45 = vadd.xlane.f32.xlu1 %v44_v25 }
 0x1dc   :  { %v46_v26 = vpop.xlane.xlu1 %45 }
 0x1dd   :  { %v47_v27 = vrot.slane %v46_v26, 4 }
 0x1df   :  { %v48_v28 = vadd.f32 %v47_v27, %v46_v26 }
 0x1e1   :  { %v49_v29 = vrot.slane %v48_v28, 2 }
 0x1e3   :  { %v50_v30 = vadd.f32 %v49_v29, %v48_v28 }
 0x1e5   :  { %v51_v31 = vrot.slane %v50_v30, 1 }
 0x1e7   :  { %v52_v32 = vadd.f32 %v51_v31, %v50_v30 }
 0x1e9   :  { %70 = vpush %v52_v32 }
 0x21a   :  { %s71_s13 = spop %70 }
 0x21b   :  { %v54_v33 = vstv %s71_s13 }
 0x21c   :  { %55 = vst [vmem:[#allocation2] sm:$0xff] %v54_v33 }
 0x21d   :  { %92 = shalt.err (!%p89_p4)
}
 0x21e   :  { %s93_s17 = scalar_lea.hbm %s145_s2, 128 }
 0x21f   :  { %p94_p5 = scmp.ne.s32.totalorder %s145_s2, %s93_s17  ;;  %p97_p6 = scmp.lt.u32.totalorder %s93_s17, %s145_s2 }
 0x221   :  { %p99_p7 = pnand %p97_p6, %p94_p5 }
 0x223   :  { %102 = shalt.err (!%p99_p7)
}
 0x224   :  { %65 = dma.vmem_to_hbm [thread:$0]  %s63_s1, 128, %s145_s2, [#allocation3]  }
 0x225   :  { %103 = dma.done.wait [#allocation3], 128  }
 0x226   :  { %104 = vsyncadd [#allocation3], 4294967168 }
 0x227   :  { %69 = vsyncpa [#allocation3], 1 }

</bundles_post_ra>
